<compile_context>
chip_gen: v5e
topology: v5e:2x2
jax: 0.10.0
libtpu: 0.0.40
codegen_flags: <defaults>
</compile_context>

<pallas_src>
import functools

import jax
import jax.numpy as jnp
from jax.experimental import pallas as pl
from jax.experimental.pallas import tpu as pltpu


def _conv_stats_kernel(x_ref, w_ref, m_ref, conv_ref, sum_ref, sq_ref, *,
                       k, w_out, m_img):
    """Per-image fused conv (9 shifted-window matmuls) + batch-stat partials.

    x_ref   : (Cin, Lf)  bf16   flat zero-padded image, Lf = H*W + 2*W + 2
    w_ref   : (k*k, Cout, Cin) bf16
    m_ref   : (2, m_img) f32    left / right edge-column masks
    conv_ref: (Cout, m_img) bf16  conv output for this image (lane-dense)
    sum_ref : (Cout, 1)  f32    per-image partial sum        (combined in wrapper)
    sq_ref  : (Cout, 1)  f32    per-image partial sum of x^2 (combined in wrapper)
    """
    # One f32 accumulator per width tap dw so the border mask is applied once
    # per group instead of once per tap.
    acc = [None] * k
    for dh in range(k):
        for dw in range(k):
            start = dh * w_out + dw                       # static lane offset
            win = x_ref[:, start:start + m_img]           # (Cin, m_img) bf16
            part = jnp.dot(w_ref[dh * k + dw], win,
                           preferred_element_type=jnp.float32)  # (Cout, m_img)
            acc[dw] = part if acc[dw] is None else acc[dw] + part
    # Zero the contributions that wrapped around the left/right image border.
    c = acc[1] + m_ref[0:1, :] * acc[0] + m_ref[1:2, :] * acc[2]
    conv_ref[...] = c.astype(conv_ref.dtype)              # bf16 HBM intermediate
    # Batch statistics from the f32 result (before the downcast).
    sum_ref[...] = jnp.sum(c, axis=1, keepdims=True)
    sq_ref[...] = jnp.sum(c * c, axis=1, keepdims=True)


def _bn_relu_kernel(conv_ref, scale_ref, shift_ref, o_ref):
    # conv_ref: (Cout, tm) bf16; scale/shift: (Cout, 1) f32; o_ref: (Cout, tm) f32
    c = conv_ref[...].astype(jnp.float32)                 # f32 VPU math (v5e-safe)
    o_ref[...] = jnp.maximum(c * scale_ref[...] + shift_ref[...], 0.0
                             ).astype(o_ref.dtype)


def _vmem_budget_bytes():
    """Generation-aware scoped-VMEM budget (leave headroom below physical)."""
    try:
        cap = pltpu.get_tpu_info().vmem_capacity_bytes    # 64 MiB v7x, 128 MiB v5e/v6e
    except Exception:
        cap = 64 * 2 ** 20                                # safe lower bound (v7x)
    return int(cap * 3 // 4)


def _pick_m_tile(m_img, target):
    """Largest multiple-of-128 divisor of m_img that is <= target (else full)."""
    target = max(128, target)
    if m_img <= target or m_img % 128:
        return m_img
    best = m_img
    for t in range(128, target + 1, 128):
        if m_img % t == 0:
            best = t
    return best


def local_forward(x_nchw, w_oihw, bias, gamma, beta, *, eps=1e-5, tile_m=2048):
    """Forward pass of the PyTorch `Local` module (training-mode BatchNorm).

    x_nchw : (N, Cin, H, W) f32
    w_oihw : (Cout, Cin, 3, 3) conv weight (PyTorch layout)
    bias, gamma, beta : (Cout,)
    returns (N, Cout, H, W) f32
    """
    del bias  # per-channel constant is cancelled exactly by training-mode BN
    N, Cin, H, W = x_nchw.shape
    Cout, Cin2, kh, kw = w_oihw.shape
    assert Cin2 == Cin and kh == kw == 3, "Local: 3x3 conv with padding=1"
    k = kh
    Hout, Wout = H, W                    # stride 1, pad 1, k 3 -> same spatial size
    M_img = Hout * Wout
    M = N * M_img
    f32, bf16 = jnp.float32, jnp.bfloat16

    # ---- wrapper glue: input-sized only, no (9*Cin, M) slab in HBM ------------
    # Flat layout with W+1 zeros on each side supplies both the top/bottom
    # padding rows and 1 element of slack so every tap window
    #     x_flat[:, dh*W + dw : dh*W + dw + H*W]
    # is in-bounds.  Left/right border wrap-reads are zeroed in-kernel.
    x_flat = jnp.pad(x_nchw.reshape(N, Cin, M_img).astype(bf16),
                     ((0, 0), (0, 0), (W + 1, W + 1)))
    Lf = M_img + 2 * W + 2
    # Weights -> (k*k, Cout, Cin): the kernel does dot((Cout,Cin),(Cin,M)) per tap.
    w_t = jnp.transpose(w_oihw, (2, 3, 0, 1)).reshape(k * k, Cout, Cin).astype(bf16)
    col = jnp.tile(jnp.arange(Wout, dtype=jnp.int32), Hout)        # w = m mod W
    masks = jnp.stack([(col != 0).astype(f32),                     # dw == 0 taps
                       (col != Wout - 1).astype(f32)])             # dw == 2 taps

    budget = _vmem_budget_bytes()

    # ---- pass 1: per-image conv (in-kernel im2col) + stat partials ------------
    blk1 = (2 * Cin * Lf + 2 * k * k * Cout * Cin + 4 * 2 * M_img
            + 2 * Cout * M_img + 4 * 2 * Cout
            + 4 * 4 * Cout * M_img)                     # incl. f32 accumulators
    vmem1 = int(min(budget, max(16 * 2 ** 20, 4 * blk1)))
    cost1 = pl.CostEstimate(
        flops=2 * Cout * (k * k * Cin) * M + 5 * Cout * M,
        transcendentals=0,
        bytes_accessed=(2 * N * Cin * Lf + 2 * k * k * Cout * Cin
                        + 4 * 2 * M_img + 2 * Cout * M + 4 * 2 * N * Cout))
    conv_t, psum, psq = pl.pallas_call(
        functools.partial(_conv_stats_kernel, k=k, w_out=Wout, m_img=M_img),
        grid=(N,),
        in_specs=[pl.BlockSpec((None, Cin, Lf), lambda n: (n, 0, 0)),
                  pl.BlockSpec((k * k, Cout, Cin), lambda n: (0, 0, 0)),
                  pl.BlockSpec((2, M_img), lambda n: (0, 0))],
        out_specs=[pl.BlockSpec((None, Cout, M_img), lambda n: (n, 0, 0)),
                   pl.BlockSpec((None, Cout, 1), lambda n: (n, 0, 0)),
                   pl.BlockSpec((None, Cout, 1), lambda n: (n, 0, 0))],
        out_shape=[jax.ShapeDtypeStruct((N, Cout, M_img), bf16),
                   jax.ShapeDtypeStruct((N, Cout, 1), f32),
                   jax.ShapeDtypeStruct((N, Cout, 1), f32)],
        compiler_params=pltpu.CompilerParams(
            dimension_semantics=("parallel",),   # per-image partials: no carry
            vmem_limit_bytes=vmem1),
        cost_estimate=cost1,
    )(x_flat, w_t, masks)

    # ---- tiny (Cout,)-sized XLA glue: batch stats -> BN affine scale/shift ----
    inv_m = 1.0 / float(M)
    mean = jnp.sum(psum, axis=0)[:, 0] * inv_m
    var = jnp.maximum(jnp.sum(psq, axis=0)[:, 0] * inv_m - mean * mean, 0.0)
    scale1 = gamma.astype(f32) * jax.lax.rsqrt(var + eps)
    shift1 = beta.astype(f32) - mean * scale1
    scale = scale1.reshape(Cout, 1)
    shift = shift1.reshape(Cout, 1)

    # ---- pass 2: BN affine + ReLU, output directly in (N, Cout, H*W) ----------
    tm = _pick_m_tile(M_img, tile_m)
    grid2 = (N, M_img // tm)
    blk2 = 2 * Cout * tm + 4 * Cout * tm + 2 * 4 * Cout
    vmem2 = int(min(budget, max(16 * 2 ** 20, 4 * blk2)))
    cost2 = pl.CostEstimate(
        flops=3 * Cout * M,
        transcendentals=0,
        bytes_accessed=2 * Cout * M + 4 * Cout * M + 2 * 4 * Cout)
    out = pl.pallas_call(
        _bn_relu_kernel,
        grid=grid2,
        in_specs=[pl.BlockSpec((None, Cout, tm), lambda n, i: (n, 0, i)),
                  pl.BlockSpec((Cout, 1), lambda n, i: (0, 0)),
                  pl.BlockSpec((Cout, 1), lambda n, i: (0, 0))],
        out_specs=pl.BlockSpec((None, Cout, tm), lambda n, i: (n, 0, i)),
        out_shape=jax.ShapeDtypeStruct((N, Cout, M_img), f32),
        compiler_params=pltpu.CompilerParams(
            dimension_semantics=("parallel", "parallel"),
            vmem_limit_bytes=vmem2),
        cost_estimate=cost2,
    )(conv_t, scale, shift)

    # Free metadata reshape (contiguous trailing dims) -> NCHW, no extra pass.
    return out.reshape(N, Cout, Hout, Wout)


def _reference(x_nchw, w_oihw, bias, gamma, beta, eps=1e-5):
    """Pure-JAX f32 reference mirroring PyTorch semantics (training-mode BN)."""
    conv = jax.lax.conv_general_dilated(
        x_nchw, w_oihw, window_strides=(1, 1), padding=((1, 1), (1, 1)),
        dimension_numbers=("NCHW", "OIHW", "NCHW"))
    conv = conv + bias.reshape(1, -1, 1, 1)
    mean = jnp.mean(conv, axis=(0, 2, 3), keepdims=True)
    var = jnp.mean((conv - mean) ** 2, axis=(0, 2, 3), keepdims=True)
    y = (conv - mean) * jax.lax.rsqrt(var + eps)
    y = y * gamma.reshape(1, -1, 1, 1) + beta.reshape(1, -1, 1, 1)
    return jnp.maximum(y, 0.0)


if __name__ == "__main__":
    # Shapes consistent with the module: Conv2d(Cin=4, Cout=8, k=3, pad=1)
    N, Cin, Cout, H, W, K = 2, 4, 8, 16, 16, 3

    key = jax.random.PRNGKey(0)
    kx, kw_, kb = jax.random.split(key, 3)
    x = jax.random.normal(kx, (N, Cin, H, W), dtype=jnp.float32)
    w = 0.1 * jax.random.normal(kw_, (Cout, Cin, K, K), dtype=jnp.float32)
    b = 0.01 * jax.random.normal(kb, (Cout,), dtype=jnp.float32)
    gamma = jnp.ones((Cout,), dtype=jnp.float32)   # PyTorch BN default init
    beta = jnp.zeros((Cout,), dtype=jnp.float32)

    out = jax.block_until_ready(local_forward(x, w, b, gamma, beta))
    ref = jax.block_until_ready(_reference(x, w, b, gamma, beta))

    assert out.shape == (N, Cout, H, W)
    # Tolerances account for bf16 MXU operands and the bf16 HBM conv
    # intermediate (per perf review); the f32 reference has neither.
    max_err = float(jnp.max(jnp.abs(out - ref)))
    mean_err = float(jnp.mean(jnp.abs(out - ref)))
    assert max_err < 7e-2 and mean_err < 1e-2, (
        f"mismatch vs reference: max {max_err:.3e}, mean {mean_err:.3e}")

    print("KERNEL_OK")
</pallas_src>

<mosaic_0001>
module attributes {stable_mosaic.version = 11 : i64} {
  func.func @_conv_stats_kernel(%arg0: i32, %arg1: memref<1x4x290xbf16, #tpu.memory_space<vmem>>, %arg2: memref<9x8x4xbf16, #tpu.memory_space<vmem>>, %arg3: memref<2x256xf32, #tpu.memory_space<vmem>>, %arg4: memref<1x8x256xbf16, #tpu.memory_space<vmem>>, %arg5: memref<1x8x1xf32, #tpu.memory_space<vmem>>, %arg6: memref<1x8x1xf32, #tpu.memory_space<vmem>>) attributes {dimension_semantics = [#tpu.dimension_semantics<parallel>], iteration_bounds = array<i64: 2>, scalar_prefetch = 0 : i64, scratch_operands = 0 : i64, tpu.core_type = #tpu.core_type<tc>, window_params = [{transform_indices = @transform_0, window_bounds = array<i64: 1, 4, 290>}, {pipeline_mode = #tpu.pipeline_mode<synchronous>, transform_indices = @transform_1, window_bounds = array<i64: 9, 8, 4>}, {pipeline_mode = #tpu.pipeline_mode<synchronous>, transform_indices = @transform_2, window_bounds = array<i64: 2, 256>}, {transform_indices = @transform_3, window_bounds = array<i64: 1, 8, 256>}, {transform_indices = @transform_4, window_bounds = array<i64: 1, 8, 1>}, {transform_indices = @transform_5, window_bounds = array<i64: 1, 8, 1>}]} {
    %c0 = arith.constant 0 : index
    %c0_0 = arith.constant 0 : index
    %c0_1 = arith.constant 0 : index
    %0 = vector.load %arg1[%c0, %c0_0, %c0_1] : memref<1x4x290xbf16, #tpu.memory_space<vmem>>, vector<1x4x256xbf16>
    %1 = vector.shape_cast %0 : vector<1x4x256xbf16> to vector<4x256xbf16>
    %c0_2 = arith.constant 0 : index
    %c0_3 = arith.constant 0 : index
    %c0_4 = arith.constant 0 : index
    %2 = vector.load %arg2[%c0_2, %c0_3, %c0_4] : memref<9x8x4xbf16, #tpu.memory_space<vmem>>, vector<1x8x4xbf16>
    %3 = vector.shape_cast %2 : vector<1x8x4xbf16> to vector<8x4xbf16>
    %cst = arith.constant dense<0.000000e+00> : vector<8x256xf32>
    %4 = tpu.matmul %3, %1, %cst {dimension_numbers = #tpu.dot_dimension_numbers<[1], [0], [0], [1], [0, 0, 1, 1], [], []>} : vector<8x4xbf16>, vector<4x256xbf16>, vector<8x256xf32> -> vector<8x256xf32>
    %c0_5 = arith.constant 0 : index
    %c0_6 = arith.constant 0 : index
    %c1 = arith.constant 1 : index
    %5 = vector.load %arg1[%c0_5, %c0_6, %c1] : memref<1x4x290xbf16, #tpu.memory_space<vmem>>, vector<1x4x256xbf16>
    %6 = vector.shape_cast %5 : vector<1x4x256xbf16> to vector<4x256xbf16>
    %c1_7 = arith.constant 1 : index
    %c0_8 = arith.constant 0 : index
    %c0_9 = arith.constant 0 : index
    %7 = vector.load %arg2[%c1_7, %c0_8, %c0_9] : memref<9x8x4xbf16, #tpu.memory_space<vmem>>, vector<1x8x4xbf16>
    %8 = vector.shape_cast %7 : vector<1x8x4xbf16> to vector<8x4xbf16>
    %cst_10 = arith.constant dense<0.000000e+00> : vector<8x256xf32>
    %9 = tpu.matmul %8, %6, %cst_10 {dimension_numbers = #tpu.dot_dimension_numbers<[1], [0], [0], [1], [0, 0, 1, 1], [], []>} : vector<8x4xbf16>, vector<4x256xbf16>, vector<8x256xf32> -> vector<8x256xf32>
    %c0_11 = arith.constant 0 : index
    %c0_12 = arith.constant 0 : index
    %c2 = arith.constant 2 : index
    %10 = vector.load %arg1[%c0_11, %c0_12, %c2] : memref<1x4x290xbf16, #tpu.memory_space<vmem>>, vector<1x4x256xbf16>
    %11 = vector.shape_cast %10 : vector<1x4x256xbf16> to vector<4x256xbf16>
    %c2_13 = arith.constant 2 : index
    %c0_14 = arith.constant 0 : index
    %c0_15 = arith.constant 0 : index
    %12 = vector.load %arg2[%c2_13, %c0_14, %c0_15] : memref<9x8x4xbf16, #tpu.memory_space<vmem>>, vector<1x8x4xbf16>
    %13 = vector.shape_cast %12 : vector<1x8x4xbf16> to vector<8x4xbf16>
    %cst_16 = arith.constant dense<0.000000e+00> : vector<8x256xf32>
    %14 = tpu.matmul %13, %11, %cst_16 {dimension_numbers = #tpu.dot_dimension_numbers<[1], [0], [0], [1], [0, 0, 1, 1], [], []>} : vector<8x4xbf16>, vector<4x256xbf16>, vector<8x256xf32> -> vector<8x256xf32>
    %c0_17 = arith.constant 0 : index
    %c0_18 = arith.constant 0 : index
    %c16 = arith.constant 16 : index
    %15 = vector.load %arg1[%c0_17, %c0_18, %c16] : memref<1x4x290xbf16, #tpu.memory_space<vmem>>, vector<1x4x256xbf16>
    %16 = vector.shape_cast %15 : vector<1x4x256xbf16> to vector<4x256xbf16>
    %c3 = arith.constant 3 : index
    %c0_19 = arith.constant 0 : index
    %c0_20 = arith.constant 0 : index
    %17 = vector.load %arg2[%c3, %c0_19, %c0_20] : memref<9x8x4xbf16, #tpu.memory_space<vmem>>, vector<1x8x4xbf16>
    %18 = vector.shape_cast %17 : vector<1x8x4xbf16> to vector<8x4xbf16>
    %cst_21 = arith.constant dense<0.000000e+00> : vector<8x256xf32>
    %19 = tpu.matmul %18, %16, %cst_21 {dimension_numbers = #tpu.dot_dimension_numbers<[1], [0], [0], [1], [0, 0, 1, 1], [], []>} : vector<8x4xbf16>, vector<4x256xbf16>, vector<8x256xf32> -> vector<8x256xf32>
    %20 = arith.addf %4, %19 : vector<8x256xf32>
    %c0_22 = arith.constant 0 : index
    %c0_23 = arith.constant 0 : index
    %c17 = arith.constant 17 : index
    %21 = vector.load %arg1[%c0_22, %c0_23, %c17] : memref<1x4x290xbf16, #tpu.memory_space<vmem>>, vector<1x4x256xbf16>
    %22 = vector.shape_cast %21 : vector<1x4x256xbf16> to vector<4x256xbf16>
    %c4 = arith.constant 4 : index
    %c0_24 = arith.constant 0 : index
    %c0_25 = arith.constant 0 : index
    %23 = vector.load %arg2[%c4, %c0_24, %c0_25] : memref<9x8x4xbf16, #tpu.memory_space<vmem>>, vector<1x8x4xbf16>
    %24 = vector.shape_cast %23 : vector<1x8x4xbf16> to vector<8x4xbf16>
    %cst_26 = arith.constant dense<0.000000e+00> : vector<8x256xf32>
    %25 = tpu.matmul %24, %22, %cst_26 {dimension_numbers = #tpu.dot_dimension_numbers<[1], [0], [0], [1], [0, 0, 1, 1], [], []>} : vector<8x4xbf16>, vector<4x256xbf16>, vector<8x256xf32> -> vector<8x256xf32>
    %26 = arith.addf %9, %25 : vector<8x256xf32>
    %c0_27 = arith.constant 0 : index
    %c0_28 = arith.constant 0 : index
    %c18 = arith.constant 18 : index
    %27 = vector.load %arg1[%c0_27, %c0_28, %c18] : memref<1x4x290xbf16, #tpu.memory_space<vmem>>, vector<1x4x256xbf16>
    %28 = vector.shape_cast %27 : vector<1x4x256xbf16> to vector<4x256xbf16>
    %c5 = arith.constant 5 : index
    %c0_29 = arith.constant 0 : index
    %c0_30 = arith.constant 0 : index
    %29 = vector.load %arg2[%c5, %c0_29, %c0_30] : memref<9x8x4xbf16, #tpu.memory_space<vmem>>, vector<1x8x4xbf16>
    %30 = vector.shape_cast %29 : vector<1x8x4xbf16> to vector<8x4xbf16>
    %cst_31 = arith.constant dense<0.000000e+00> : vector<8x256xf32>
    %31 = tpu.matmul %30, %28, %cst_31 {dimension_numbers = #tpu.dot_dimension_numbers<[1], [0], [0], [1], [0, 0, 1, 1], [], []>} : vector<8x4xbf16>, vector<4x256xbf16>, vector<8x256xf32> -> vector<8x256xf32>
    %32 = arith.addf %14, %31 : vector<8x256xf32>
    %c0_32 = arith.constant 0 : index
    %c0_33 = arith.constant 0 : index
    %c32 = arith.constant 32 : index
    %33 = vector.load %arg1[%c0_32, %c0_33, %c32] : memref<1x4x290xbf16, #tpu.memory_space<vmem>>, vector<1x4x256xbf16>
    %34 = vector.shape_cast %33 : vector<1x4x256xbf16> to vector<4x256xbf16>
    %c6 = arith.constant 6 : index
    %c0_34 = arith.constant 0 : index
    %c0_35 = arith.constant 0 : index
    %35 = vector.load %arg2[%c6, %c0_34, %c0_35] : memref<9x8x4xbf16, #tpu.memory_space<vmem>>, vector<1x8x4xbf16>
    %36 = vector.shape_cast %35 : vector<1x8x4xbf16> to vector<8x4xbf16>
    %cst_36 = arith.constant dense<0.000000e+00> : vector<8x256xf32>
    %37 = tpu.matmul %36, %34, %cst_36 {dimension_numbers = #tpu.dot_dimension_numbers<[1], [0], [0], [1], [0, 0, 1, 1], [], []>} : vector<8x4xbf16>, vector<4x256xbf16>, vector<8x256xf32> -> vector<8x256xf32>
    %38 = arith.addf %20, %37 : vector<8x256xf32>
    %c0_37 = arith.constant 0 : index
    %c0_38 = arith.constant 0 : index
    %c33 = arith.constant 33 : index
    %39 = vector.load %arg1[%c0_37, %c0_38, %c33] : memref<1x4x290xbf16, #tpu.memory_space<vmem>>, vector<1x4x256xbf16>
    %40 = vector.shape_cast %39 : vector<1x4x256xbf16> to vector<4x256xbf16>
    %c7 = arith.constant 7 : index
    %c0_39 = arith.constant 0 : index
    %c0_40 = arith.constant 0 : index
    %41 = vector.load %arg2[%c7, %c0_39, %c0_40] : memref<9x8x4xbf16, #tpu.memory_space<vmem>>, vector<1x8x4xbf16>
    %42 = vector.shape_cast %41 : vector<1x8x4xbf16> to vector<8x4xbf16>
    %cst_41 = arith.constant dense<0.000000e+00> : vector<8x256xf32>
    %43 = tpu.matmul %42, %40, %cst_41 {dimension_numbers = #tpu.dot_dimension_numbers<[1], [0], [0], [1], [0, 0, 1, 1], [], []>} : vector<8x4xbf16>, vector<4x256xbf16>, vector<8x256xf32> -> vector<8x256xf32>
    %44 = arith.addf %26, %43 : vector<8x256xf32>
    %c0_42 = arith.constant 0 : index
    %c0_43 = arith.constant 0 : index
    %c34 = arith.constant 34 : index
    %45 = vector.load %arg1[%c0_42, %c0_43, %c34] : memref<1x4x290xbf16, #tpu.memory_space<vmem>>, vector<1x4x256xbf16>
    %46 = vector.shape_cast %45 : vector<1x4x256xbf16> to vector<4x256xbf16>
    %c8 = arith.constant 8 : index
    %c0_44 = arith.constant 0 : index
    %c0_45 = arith.constant 0 : index
    %47 = vector.load %arg2[%c8, %c0_44, %c0_45] : memref<9x8x4xbf16, #tpu.memory_space<vmem>>, vector<1x8x4xbf16>
    %48 = vector.shape_cast %47 : vector<1x8x4xbf16> to vector<8x4xbf16>
    %cst_46 = arith.constant dense<0.000000e+00> : vector<8x256xf32>
    %49 = tpu.matmul %48, %46, %cst_46 {dimension_numbers = #tpu.dot_dimension_numbers<[1], [0], [0], [1], [0, 0, 1, 1], [], []>} : vector<8x4xbf16>, vector<4x256xbf16>, vector<8x256xf32> -> vector<8x256xf32>
    %50 = arith.addf %32, %49 : vector<8x256xf32>
    %c0_47 = arith.constant 0 : index
    %c0_48 = arith.constant 0 : index
    %51 = vector.load %arg3[%c0_47, %c0_48] : memref<2x256xf32, #tpu.memory_space<vmem>>, vector<1x256xf32>
    %52 = vector.broadcast %51 : vector<1x256xf32> to vector<8x256xf32>
    %53 = arith.mulf %52, %38 : vector<8x256xf32>
    %54 = arith.addf %44, %53 : vector<8x256xf32>
    %c1_49 = arith.constant 1 : index
    %c0_50 = arith.constant 0 : index
    %55 = vector.load %arg3[%c1_49, %c0_50] : memref<2x256xf32, #tpu.memory_space<vmem>>, vector<1x256xf32>
    %56 = vector.broadcast %55 : vector<1x256xf32> to vector<8x256xf32>
    %57 = arith.mulf %56, %50 : vector<8x256xf32>
    %58 = arith.addf %54, %57 : vector<8x256xf32>
    %59 = arith.truncf %58 : vector<8x256xf32> to vector<8x256xbf16>
    %c0_51 = arith.constant 0 : index
    %c0_52 = arith.constant 0 : index
    %c0_53 = arith.constant 0 : index
    %60 = vector.load %arg4[%c0_51, %c0_52, %c0_53] : memref<1x8x256xbf16, #tpu.memory_space<vmem>>, vector<1x8x256xbf16>
    %61 = vector.shape_cast %60 : vector<1x8x256xbf16> to vector<8x256xbf16>
    %62 = vector.shape_cast %59 : vector<8x256xbf16> to vector<1x8x256xbf16>
    tpu.vector_store %arg4[%c0_51, %c0_52, %c0_53], %62 {strides = array<i32>} : memref<1x8x256xbf16, #tpu.memory_space<vmem>>, vector<1x8x256xbf16>,
    %cst_54 = arith.constant dense<0.000000e+00> : vector<8xf32>
    %63 = vector.multi_reduction <add>, %58, %cst_54 [1] : vector<8x256xf32> to vector<8xf32>
    %64 = vector.shape_cast %63 : vector<8xf32> to vector<8x1xf32>
    %c0_55 = arith.constant 0 : index
    %c0_56 = arith.constant 0 : index
    %c0_57 = arith.constant 0 : index
    %65 = vector.load %arg5[%c0_55, %c0_56, %c0_57] : memref<1x8x1xf32, #tpu.memory_space<vmem>>, vector<1x8x1xf32>
    %66 = vector.shape_cast %65 : vector<1x8x1xf32> to vector<8x1xf32>
    %67 = vector.shape_cast %64 : vector<8x1xf32> to vector<1x8x1xf32>
    tpu.vector_store %arg5[%c0_55, %c0_56, %c0_57], %67 {strides = array<i32>} : memref<1x8x1xf32, #tpu.memory_space<vmem>>, vector<1x8x1xf32>,
    %68 = arith.mulf %58, %58 : vector<8x256xf32>
    %cst_58 = arith.constant dense<0.000000e+00> : vector<8xf32>
    %69 = vector.multi_reduction <add>, %68, %cst_58 [1] : vector<8x256xf32> to vector<8xf32>
    %70 = vector.shape_cast %69 : vector<8xf32> to vector<8x1xf32>
    %c0_59 = arith.constant 0 : index
    %c0_60 = arith.constant 0 : index
    %c0_61 = arith.constant 0 : index
    %71 = vector.load %arg6[%c0_59, %c0_60, %c0_61] : memref<1x8x1xf32, #tpu.memory_space<vmem>>, vector<1x8x1xf32>
    %72 = vector.shape_cast %71 : vector<1x8x1xf32> to vector<8x1xf32>
    %73 = vector.shape_cast %70 : vector<8x1xf32> to vector<1x8x1xf32>
    tpu.vector_store %arg6[%c0_59, %c0_60, %c0_61], %73 {strides = array<i32>} : memref<1x8x1xf32, #tpu.memory_space<vmem>>, vector<1x8x1xf32>,
    return
  }
  func.func @transform_0(%arg0: i32) -> (i32, i32, i32) {
    %c0_i32 = arith.constant 0 : i32
    %c0_i32_0 = arith.constant 0 : i32
    %c0_i32_1 = arith.constant 0 : i32
    return %arg0, %c0_i32, %c0_i32_0 : i32, i32, i32
  }
  func.func @transform_1(%arg0: i32) -> (i32, i32, i32) {
    %c0_i32 = arith.constant 0 : i32
    %c0_i32_0 = arith.constant 0 : i32
    %c0_i32_1 = arith.constant 0 : i32
    %c0_i32_2 = arith.constant 0 : i32
    return %c0_i32, %c0_i32_0, %c0_i32_1 : i32, i32, i32
  }
  func.func @transform_2(%arg0: i32) -> (i32, i32) {
    %c0_i32 = arith.constant 0 : i32
    %c0_i32_0 = arith.constant 0 : i32
    %c0_i32_1 = arith.constant 0 : i32
    return %c0_i32, %c0_i32_0 : i32, i32
  }
  func.func @transform_3(%arg0: i32) -> (i32, i32, i32) {
    %c0_i32 = arith.constant 0 : i32
    %c0_i32_0 = arith.constant 0 : i32
    %c0_i32_1 = arith.constant 0 : i32
    return %arg0, %c0_i32, %c0_i32_0 : i32, i32, i32
  }
  func.func @transform_4(%arg0: i32) -> (i32, i32, i32) {
    %c0_i32 = arith.constant 0 : i32
    %c0_i32_0 = arith.constant 0 : i32
    %c0_i32_1 = arith.constant 0 : i32
    return %arg0, %c0_i32, %c0_i32_0 : i32, i32, i32
  }
  func.func @transform_5(%arg0: i32) -> (i32, i32, i32) {
    %c0_i32 = arith.constant 0 : i32
    %c0_i32_0 = arith.constant 0 : i32
    %c0_i32_1 = arith.constant 0 : i32
    return %arg0, %c0_i32, %c0_i32_0 : i32, i32, i32
  }
}

</mosaic_0001>

<bundles_post_ra>
// kernel: tpu_custom_call.1
= control target key start
LH: loop header
LB: loop body
LE: loop exit
PB: predicated region body
PF: predicated region fallthrough
CT: control target
= control target key end

     0   :  { %11 = vsyncpa [#allocation3], 0  ;;  %s1279_s0 = inlined_call_operand.vmem [shape: bf16[2,4,290], index: 0, kind: input, shape index: {}]   ;;  %s1280_s1 = inlined_call_operand.vmem [shape: bf16[9,8,4], index: 1, kind: input, shape index: {}]   ;;  %s1281_s2 = inlined_call_operand.vmem [shape: f32[2,256], index: 2, kind: input, shape index: {}]   ;;  %s1282_s3 = inlined_call_operand.hbm [shape: bf16[2,8,256], index: 3, kind: output, shape index: {0}]   ;;  %s1283_s4 = inlined_call_operand.vmem [shape: f32[2,8,1], index: 4, kind: output, shape index: {1}]   ;;  %s1284_s5 = inlined_call_operand.vmem [shape: f32[2,8,1], index: 5, kind: output, shape index: {2}]  }
   0x1   :  { %13 = vsyncpa [#allocation3 + $0x1], 0  ;;  %s1091_s18 = smov 0   ;;  %s1093_s19 = smov 0  }
   0x2   :  { %s1095_s20 = smov 0   ;;  %s1097_s21 = smov 0  }
   0x3 LB: > { %s1112_s22 = sadd.s32 4294967295, %s1051_s21   ;;  %s900_s23 = sadd.s32 4294967294, %s1051_s21   ;;  %s1051_s21 = sphi %s1097_s21, %s1290_s21   ;;  %s1047_s20 = sphi %s1095_s20, %s1289_s20   ;;  %s1043_s19 = sphi %s1093_s19, %s1288_s19   ;;  %s1039_s18 = sphi %s1091_s18, %s1287_s18  }
   0x4   : > { %s1116_s24 = sadd.s32 1, %s1051_s21   ;;  %s94_s25 = sadd.s32 1, %s1047_s20 }
   0x5   : > { %s91_s26 = ssub.s32 %s1051_s21, %s1116_s24  ;;  %p104_p0 = scmp.ne.s32.totalorder %s1047_s20, %s1043_s19 }
   0x6   : > { %p92_p1 = scmp.eq.s32.totalorder %s91_s26, 0  ;;  %p105_p2 = scmp.eq.s32.totalorder %s1112_s22, 1 }
   0x7   : > { %p110_p3 = scmp.ne.s32.totalorder %s1043_s19, %s1039_s18  ;;  %p111_p4 = scmp.eq.s32.totalorder %s900_s23, 1 }
   0x8   : > { %s1127_s27 = scalar_select %p92_p1, %s1047_s20, %s94_s25  }
   0x9   : > { %p1129_p5 = por %p105_p2, %p104_p0  ;;  %p1133_p6 = por %p111_p4, %p110_p3 }
   0xa   : > { %p903_p7 = scmp.ge.s32.totalorder %s1051_s21, 1  ;;  %p195_p8 = scmp.lt.s32.totalorder %s1051_s21, 3 }
   0xc   : > { %p196_p9 = pnand %p903_p7, %p195_p8 }
   0xd   : > { %p231_p10 = scmp.lt.s32.totalorder (!%p196_p9), %s1112_s22, 1  ;;  %s1053_s10 = smov (!%p196_p9), 112  }
   0xe   : > { %199 = sbr.rel (%p196_p9) target bundleno = 479 (0x1df), region = 32  ;;  %s1054_s11 = smov (!%p196_p9), 111  }
   0xf   : > { %s1055_s12 = smov (!%p196_p9), 127   ;;  %s1056_s13 = smov (!%p196_p9), 110  }
  0x10   : > { %s1057_s14 = smov (!%p196_p9), 126   ;;  %s1058_s15 = smov (!%p196_p9), 96  }
  0x11   : > { %s1059_s16 = smov (!%p196_p9), 95   ;;  %s1060_s17 = smov (!%p196_p9), 94  }
  0x12   : > { %s1009_s8 = scalar_lea.hbm (!%p196_p9), %s1282_s3, 16 }
  0x13   : > { %s1141_s30 = scalar_select %p231_p10, %s1112_s22, 1  ;;  %vm275_vm0 = vcmask 1041408   ;;  %v246_v35 = vld [vmem:[%s1280_s1] sm:$0xf]  ;;  %vm271_vm1 = vcmask 31744   ;;  %vm362_vm2 = vcmask 908288  }
  0x14   : > { %vm268_vm3 = vcmask 916480   ;;  %v910_v47 = vld [vmem:[%s1280_s1 + $0xc] sm:$0xf]  ;;  %vm413_vm4 = vcmask 1039360   ;;  %v915_v55 = vld [vmem:[%s1280_s1 + $0x10] sm:$0xf] }
  0x15   : > { %s941_s6 = smul.u32 6, %s1141_s30  ;;  %v908_v59 = vld [vmem:[%s1280_s1 + $0x4] sm:$0xf]  ;;  %vm468_vm5 = vcmask 900096   ;;  %vm519_vm6 = vcmask 1031168   ;;  %vm574_vm7 = vcmask 785408  }
  0x16   : > { %vm631_vm8 = vcmask 777216   ;;  %vm688_vm9 = vcmask 769024  }
  0x17   : > { %s1147_s9 = scalar_lea.vmem %s1279_s0, %s941_s6 }
  0x18   : > { %v247_v0 = vld [vmem:[%s1147_s9] sm:$0x3f] }
  0x19   : > { %255 = vst [vmem:[#allocation1] ss:$4 sm:$0xff] %v247_v0  ;;  %v245_v1 = vld [vmem:[%s1147_s9] sm:$0xf] }
  0x1a   : > { %v345_v5 = vld [vmem:[%s1147_s9] sm:$0x3f] }
  0x1b   : > { %v451_v11 = vld [vmem:[%s1147_s9] sm:$0x3f] }
  0x1c   : > { %v557_v18 = vld [vmem:[%s1147_s9] sm:$0x3f] }
  0x1d   : > { %v614_v22 = vld [vmem:[%s1147_s9] sm:$0x3f] }
  0x1e   : > { %v671_v26 = vld [vmem:[%s1147_s9] sm:$0x3f] }
  0x20   : > { %v256_v2 = vld.sshfl [vmem:[#allocation1] sm:$0xff pattern:$0x73625140]  ;;  %v260_v3 = vld.sshfl [vmem:[#allocation1 + $0x10] sm:$0xff pattern:$0x73625140] }
  0x21   : > { %262 = vrot.lane.b32.xlu0 %v256_v2, %s1053_s10  ;;  %266 = vrot.lane.b32.xlu1 %v260_v3, %s1053_s10  ;;  %v258_v4 = vld.sshfl [vmem:[#allocation1 + $0x8] sm:$0xff pattern:$0x73625140] }
  0x22   : > { %309 = vst [vmem:[#allocation1] ss:$4 sm:$0xff] %v245_v1 }
  0x29   : > { %264 = vrot.lane.b32.xlu0 %v258_v4, %s1053_s10  ;;  %v1152_v6 = vld.sshfl [vmem:[#allocation1] sm:$0xff pattern:$0x73625140]  ;;  %v1154_v7 = vld.sshfl [vmem:[#allocation1 + $0x8] sm:$0xff pattern:$0x73625140] }
  0x2a   : > { %349 = vst [vmem:[#allocation1] ss:$4 sm:$0xff] %v345_v5  ;;  %v315_v33 = vsel %vm275_vm0, %v1152_v6, 0  ;;  %v317_v34 = vsel %vm275_vm0, %v1154_v7, 0  ;;  %v920_v4 = vld [vmem:[%s1280_s1 + $0x14] sm:$0xf] }
  0x2b   : > { %326 = vmatpush.bf16.msra.mxu2 %v315_v33  ;;  %339 = vmatpush.bf16.msra.mxu3 %v317_v34  ;;  %s216_s10 = sand.u32 1, %s1043_s19  }
  0x2c   : > { %s763_s23 = scalar_lea.sflag [#allocation3], %s216_s10 }
  0x2e   : > { %913 = vmatmul.msk.bf16.vlgmr.msra.gmra.mxu2 %vm271_vm1, %v246_v35  ;;  %914 = vmatmul.msk.bf16.vlgmr.msra.gmra.mxu3 %vm271_vm1, %v246_v35  ;;  %v931_v35 = vld [vmem:[%s1280_s1 + $0x20] sm:$0xf] }
  0x31   : > { %v350_v8 = vld.sshfl [vmem:[#allocation1] sm:$0xff pattern:$0x73625140]  ;;  %v352_v9 = vld.sshfl [vmem:[#allocation1 + $0x8] sm:$0xff pattern:$0x73625140] }
  0x32   : > { %356 = vrot.lane.b32.xlu1 %v350_v8, %s1054_s11  ;;  %v354_v10 = vld.sshfl [vmem:[#allocation1 + $0x10] sm:$0xff pattern:$0x73625140]  ;;  %358 = vrot.lane.b32.xlu2 %v352_v9, %s1054_s11 }
  0x33   : > { %400 = vst [vmem:[#allocation1] ss:$4 sm:$0xff] %v247_v0 }
  0x3a   : > { %v405_v12 = vld.sshfl [vmem:[#allocation1 + $0x10] sm:$0xff pattern:$0x73625140]  ;;  %v403_v13 = vld.sshfl [vmem:[#allocation1 + $0x8] sm:$0xff pattern:$0x73625140]  ;;  %360 = vrot.lane.b32.xlu2 %v354_v10, %s1054_s11 }
  0x3b   : > { %409 = vrot.lane.b32.xlu1 %v403_v13, %s1055_s12  ;;  %v401_v14 = vld.sshfl [vmem:[#allocation1] sm:$0xff pattern:$0x73625140]  ;;  %s940_s11 = sshll.u32 %s1112_s22, 3 }
  0x3c   : > { %407 = vrot.lane.b32.xlu0 %v401_v14, %s1055_s12  ;;  %455 = vst [vmem:[#allocation1] ss:$4 sm:$0xff] %v451_v11  ;;  %v909_v11 = vld [vmem:[%s1280_s1 + $0x8] sm:$0xf] }
  0x42   : > { %411 = vrot.lane.b32.xlu2 %v405_v12, %s1055_s12  ;;  %s904_s12 = sshll.u32 %s216_s10, 3 }
  0x43   : > { %v458_v15 = vld.sshfl [vmem:[#allocation1 + $0x8] sm:$0xff pattern:$0x73625140]  ;;  %v460_v16 = vld.sshfl [vmem:[#allocation1 + $0x10] sm:$0xff pattern:$0x73625140] }
  0x44   : > { %464 = vrot.lane.b32.xlu1 %v458_v15, %s1056_s13  ;;  %v456_v17 = vld.sshfl [vmem:[#allocation1] sm:$0xff pattern:$0x73625140]  ;;  %s218_s22 = scalar_lea.vmem [#allocation2], %s904_s12 }
  0x45   : > { %462 = vrot.lane.b32.xlu0 %v456_v17, %s1056_s13  ;;  %506 = vst [vmem:[#allocation1] ss:$4 sm:$0xff] %v247_v0 }
  0x4a   : > { %466 = vrot.lane.b32.xlu2 %v460_v16, %s1056_s13 }
  0x4c   : > { %v509_v19 = vld.sshfl [vmem:[#allocation1 + $0x8] sm:$0xff pattern:$0x73625140]  ;;  %v511_v20 = vld.sshfl [vmem:[#allocation1 + $0x10] sm:$0xff pattern:$0x73625140] }
  0x4d   : > { %515 = vrot.lane.b32.xlu1 %v509_v19, %s1057_s14  ;;  %v507_v21 = vld.sshfl [vmem:[#allocation1] sm:$0xff pattern:$0x73625140]  ;;  %v925_v19 = vld [vmem:[%s1280_s1 + $0x18] sm:$0xf] }
  0x4e   : > { %513 = vrot.lane.b32.xlu0 %v507_v21, %s1057_s14  ;;  %561 = vst [vmem:[#allocation1] ss:$4 sm:$0xff] %v557_v18 }
  0x52   : > { %517 = vrot.lane.b32.xlu2 %v511_v20, %s1057_s14 }
  0x55   : > { %v564_v23 = vld.sshfl [vmem:[#allocation1 + $0x8] sm:$0xff pattern:$0x73625140]  ;;  %v566_v24 = vld.sshfl [vmem:[#allocation1 + $0x10] sm:$0xff pattern:$0x73625140] }
  0x56   : > { %570 = vrot.lane.b32.xlu1 %v564_v23, %s1058_s15  ;;  %v562_v25 = vld.sshfl [vmem:[#allocation1] sm:$0xff pattern:$0x73625140] }
  0x57   : > { %568 = vrot.lane.b32.xlu0 %v562_v25, %s1058_s15  ;;  %618 = vst [vmem:[#allocation1] ss:$4 sm:$0xff] %v614_v22 }
  0x5a   : > { %572 = vrot.lane.b32.xlu2 %v566_v24, %s1058_s15  ;;  %s782_s15 = scalar_lea.hbm %s1282_s3, %s940_s11 }
  0x5e   : > { %v623_v27 = vld.sshfl [vmem:[#allocation1 + $0x10] sm:$0xff pattern:$0x73625140]  ;;  %v621_v28 = vld.sshfl [vmem:[#allocation1 + $0x8] sm:$0xff pattern:$0x73625140] }
  0x5f   : > { %627 = vrot.lane.b32.xlu1 %v621_v28, %s1059_s16  ;;  %v619_v29 = vld.sshfl [vmem:[#allocation1] sm:$0xff pattern:$0x73625140] }
  0x60   : > { %625 = vrot.lane.b32.xlu0 %v619_v29, %s1059_s16  ;;  %675 = vst [vmem:[#allocation1] ss:$4 sm:$0xff] %v671_v26 }
  0x62   : > { %629 = vrot.lane.b32.xlu2 %v623_v27, %s1059_s16  ;;  %v928_v27 = vld [vmem:[%s1280_s1 + $0x1c] sm:$0xf]  ;;  %s1240_s16 = sshll.u32 %s218_s22, 4  ;;  %s785_s16 = int_to_ptr.vmem [resolvable:$true] %s1240_s16 }
  0x67   : > { %v678_v30 = vld.sshfl [vmem:[#allocation1 + $0x8] sm:$0xff pattern:$0x73625140]  ;;  %v676_v31 = vld.sshfl [vmem:[#allocation1] sm:$0xff pattern:$0x73625140] }
  0x68   : > { %684 = vrot.lane.b32.xlu1 %v678_v30, %s1060_s17  ;;  %682 = vrot.lane.b32.xlu0 %v676_v31, %s1060_s17  ;;  %v680_v32 = vld.sshfl [vmem:[#allocation1 + $0x10] sm:$0xff pattern:$0x73625140] }
  0x6a   : > { %686 = vrot.lane.b32.xlu2 %v680_v32, %s1060_s17  ;;  %s786_s17 = sshll.u32 %s782_s15, 4  ;;  %s787_s17 = int_to_ptr.hbm [resolvable:$true] %s786_s17 }
  0x6b   : > { %s1003_s25 = sshra.s32 %s787_s17, 4  ;;  %s1004_s25 = int_to_ptr.hbm [resolvable:$true] %s1003_s25 }
  0x6c   : > { %s1005_s26 = scalar_lea.hbm %s1004_s25, 8  ;;  %p1010_p0 = scmp.lt.s32.totalorder %s1004_s25, %s1282_s3 }
  0x6d   : > { %p1006_p11 = scmp.ne.s32.totalorder %s1004_s25, %s1005_s26  ;;  %p1011_p1 = scmp.lt.s32.totalorder %s1009_s8, %s1005_s26 }
  0x6f   : > { %p1007_p12 = pnand %p1006_p11, %p1129_p5  ;;  %p1012_p2 = por %p1011_p1, %p1010_p0 }
  0x71   : > { %p1008_p13 = pneg %p1007_p12 }
  0x73   : > { %p1013_p3 = pnand %p1012_p2, %p1008_p13 }
  0x8c   : > { %v359_v36 = vpop.permute.xlu2 %358 }
  0x93   : > { %v263_v37 = vpop.permute.xlu0 %262  ;;  %v267_v39 = vpop.permute.xlu1 %266 }
  0x94   : > { %v361_v38 = vpop.permute.xlu2 %360 }
  0x95   : > { %v364_v40 = vsel %vm362_vm2, %v359_v36, %v361_v38 }
  0x96   : > { %v372_v44 = vsel %vm275_vm0, %v364_v40, 0 }
  0x9b   : > { %v265_v41 = vpop.permute.xlu0 %264 }
  0x9c   : > { %v269_v42 = vsel %vm268_vm3, %v263_v37, %v265_v41  ;;  %v270_v43 = vsel %vm268_vm3, %v265_v41, %v267_v39  ;;  %v412_v51 = vpop.permute.xlu2 %411 }
  0x9d   : > { %v277_v45 = vsel %vm275_vm0, %v269_v42, 0  ;;  %v280_v46 = vsel %vm275_vm0, %v270_v43, 0 }
  0x9e   : > { %289 = vmatpush.bf16.msra.mxu0 %v277_v45  ;;  %302 = vmatpush.bf16.msra.mxu1 %v280_v46 }
  0xa1   : > { %911 = vmatmul.msk.bf16.vlgmr.msra.gmra.mxu0 %vm271_vm1, %v910_v47  ;;  %912 = vmatmul.msk.bf16.vlgmr.msra.gmra.mxu1 %vm271_vm1, %v910_v47 }
  0xa2   : > { %394 = vmatpush.bf16.msrb.mxu1 %v372_v44 }
  0xa4   : > { %v357_v48 = vpop.permute.xlu1 %356  ;;  %v467_v60 = vpop.permute.xlu2 %466 }
  0xa5   : > { %v363_v49 = vsel %vm362_vm2, %v357_v48, %v359_v36 }
  0xa6   : > { %v369_v50 = vsel %vm275_vm0, %v363_v49, 0 }
  0xa7   : > { %381 = vmatpush.bf16.msrb.mxu0 %v369_v50 }
  0xac   : > { %v518_v3 = vpop.permute.xlu2 %517 }
  0xad   : > { %v410_v52 = vpop.permute.xlu1 %409 }
  0xae   : > { %v408_v53 = vpop.permute.xlu0 %407  ;;  %v415_v54 = vsel %vm413_vm4, %v410_v52, %v412_v51 }
  0xaf   : > { %v414_v56 = vsel %vm413_vm4, %v408_v53, %v410_v52  ;;  %v423_v57 = vsel %vm275_vm0, %v415_v54, 0 }
  0xb0   : > { %v420_v58 = vsel %vm275_vm0, %v414_v56, 0  ;;  %445 = vmatpush.bf16.msrb.mxu3 %v423_v57 }
  0xb1   : > { %432 = vmatpush.bf16.msrb.mxu2 %v420_v58  ;;  %916 = vmatmul.msk.bf16.vlgmr.msrb.gmra.mxu0 %vm271_vm1, %v915_v55  ;;  %v328_v36 = vpop.f32.mrf.mxu2  ;;  %v341_v37 = vpop.f32.mrf.mxu3 }
  0xb2   : > { %917 = vmatmul.msk.bf16.vlgmr.msrb.gmra.mxu1 %vm271_vm1, %v915_v55 }
  0xb3   : > { %919 = vmatmul.msk.bf16.vlgmr.msrb.gmra.mxu3 %vm271_vm1, %v908_v59 }
  0xb4   : > { %918 = vmatmul.msk.bf16.vlgmr.msrb.gmra.mxu2 %vm271_vm1, %v908_v59  ;;  %v573_v12 = vpop.permute.xlu2 %572 }
  0xb6   : > { %v465_v61 = vpop.permute.xlu1 %464 }
  0xb7   : > { %v470_v62 = vsel %vm468_vm5, %v465_v61, %v467_v60  ;;  %v463_v63 = vpop.permute.xlu0 %462 }
  0xb8   : > { %v478_v0 = vsel %vm275_vm0, %v470_v62, 0  ;;  %v469_v1 = vsel %vm468_vm5, %v463_v63, %v465_v61 }
  0xb9   : > { %v475_v2 = vsel %vm275_vm0, %v469_v1, 0  ;;  %500 = vmatpush.bf16.msra.mxu1 %v478_v0  ;;  %v330_v38 = vpop.f32.mrf.mxu2  ;;  %v343_v39 = vpop.f32.mrf.mxu3  ;;  %v728_v0 = vld [vmem:[%s1281_s2] ss:$2 sm:$0x3] }
  0xba   : > { %487 = vmatpush.bf16.msra.mxu0 %v475_v2 }
  0xbc   : > { %v630_v20 = vpop.permute.xlu2 %629 }
  0xbf   : > { %v516_v5 = vpop.permute.xlu1 %515 }
  0xc0   : > { %v521_v6 = vsel %vm519_vm6, %v516_v5, %v518_v3  ;;  %v514_v7 = vpop.permute.xlu0 %513 }
  0xc1   : > { %v529_v8 = vsel %vm275_vm0, %v521_v6, 0  ;;  %v520_v9 = vsel %vm519_vm6, %v514_v7, %v516_v5  ;;  %921 = vmatmul.msk.bf16.vlgmr.msra.gmra.mxu0 %vm271_vm1, %v920_v4  ;;  %v730_v7 = vperm.slane %v728_v0, 0 }
  0xc2   : > { %v526_v10 = vsel %vm275_vm0, %v520_v9, 0  ;;  %551 = vmatpush.bf16.msra.mxu3 %v529_v8  ;;  %922 = vmatmul.msk.bf16.vlgmr.msra.gmra.mxu1 %vm271_vm1, %v920_v4  ;;  %v934_v4 = vld [vmem:[%s1281_s2 + $0x1] ss:$2 sm:$0x3] }
  0xc3   : > { %538 = vmatpush.bf16.msra.mxu2 %v526_v10 }
  0xc4   : > { %v687_v28 = vpop.permute.xlu2 %686 }
  0xc5   : > { %924 = vmatmul.msk.bf16.vlgmr.msra.gmra.mxu3 %vm271_vm1, %v909_v11 }
  0xc6   : > { %923 = vmatmul.msk.bf16.vlgmr.msra.gmra.mxu2 %vm271_vm1, %v909_v11  ;;  %v731_v11 = vperm.slane %v728_v0, 1 }
  0xc8   : > { %v571_v13 = vpop.permute.xlu1 %570 }
  0xc9   : > { %v576_v14 = vsel %vm574_vm7, %v571_v13, %v573_v12  ;;  %v569_v15 = vpop.permute.xlu0 %568 }
  0xca   : > { %v584_v16 = vsel %vm275_vm0, %v576_v14, 0  ;;  %v575_v17 = vsel %vm574_vm7, %v569_v15, %v571_v13  ;;  %v741_v14 = vperm.slane %v934_v4, 0 }
  0xcb   : > { %v581_v18 = vsel %vm275_vm0, %v575_v17, 0  ;;  %606 = vmatpush.bf16.msrb.mxu1 %v584_v16 }
  0xcc   : > { %593 = vmatpush.bf16.msrb.mxu0 %v581_v18  ;;  %v742_v18 = vperm.slane %v934_v4, 1 }
  0xd1   : > { %v628_v21 = vpop.permute.xlu1 %627  ;;  %926 = vmatmul.msk.bf16.vlgmr.msrb.gmra.mxu0 %vm271_vm1, %v925_v19 }
  0xd2   : > { %v633_v22 = vsel %vm631_vm8, %v628_v21, %v630_v20  ;;  %v626_v23 = vpop.permute.xlu0 %625  ;;  %927 = vmatmul.msk.bf16.vlgmr.msrb.gmra.mxu1 %vm271_vm1, %v925_v19 }
  0xd3   : > { %v641_v24 = vsel %vm275_vm0, %v633_v22, 0  ;;  %v632_v25 = vsel %vm631_vm8, %v626_v23, %v628_v21 }
  0xd4   : > { %v638_v26 = vsel %vm275_vm0, %v632_v25, 0  ;;  %663 = vmatpush.bf16.msrb.mxu3 %v641_v24 }
  0xd5   : > { %650 = vmatpush.bf16.msrb.mxu2 %v638_v26 }
  0xd7   : > { %930 = vmatmul.msk.bf16.vlgmr.msrb.gmra.mxu3 %vm271_vm1, %v928_v27 }
  0xd8   : > { %929 = vmatmul.msk.bf16.vlgmr.msrb.gmra.mxu2 %vm271_vm1, %v928_v27 }
  0xda   : > { %v685_v29 = vpop.permute.xlu1 %684  ;;  %v683_v30 = vpop.permute.xlu0 %682 }
  0xdb   : > { %v690_v31 = vsel %vm688_vm9, %v685_v29, %v687_v28  ;;  %v689_v32 = vsel %vm688_vm9, %v683_v30, %v685_v29 }
  0xdc   : > { %v698_v33 = vsel %vm275_vm0, %v690_v31, 0  ;;  %v695_v34 = vsel %vm275_vm0, %v689_v32, 0 }
  0xdd   : > { %707 = vmatpush.bf16.msra.mxu0 %v695_v34  ;;  %720 = vmatpush.bf16.msra.mxu1 %v698_v33 }
  0xe1   : > { %932 = vmatmul.msk.bf16.vlgmr.msra.gmra.mxu0 %vm271_vm1, %v931_v35 }
  0xe2   : > { %933 = vmatmul.msk.bf16.vlgmr.msra.gmra.mxu1 %vm271_vm1, %v931_v35 }
 0x11e   : > { %v291_v40 = vpop.f32.mrf.mxu0  ;;  %v304_v41 = vpop.f32.mrf.mxu1 }
 0x11f   : > { %v329_v1 = vadd.f32 %v328_v36, %v291_v40  ;;  %v342_v2 = vadd.f32 %v341_v37, %v304_v41 }
 0x126   : > { %v293_v42 = vpop.f32.mrf.mxu0  ;;  %v306_v43 = vpop.f32.mrf.mxu1 }
 0x12e   : > { %v383_v44 = vpop.f32.mrf.mxu0 }
 0x12f   : > { %v396_v45 = vpop.f32.mrf.mxu1 }
 0x136   : > { %v447_v46 = vpop.f32.mrf.mxu3  ;;  %v385_v47 = vpop.f32.mrf.mxu0 }
 0x137   : > { %v434_v48 = vpop.f32.mrf.mxu2  ;;  %v398_v49 = vpop.f32.mrf.mxu1  ;;  %v448_v9 = vadd.f32 %v447_v46, %v396_v45 }
 0x138   : > { %v435_v5 = vadd.f32 %v434_v48, %v383_v44 }
 0x13e   : > { %v449_v50 = vpop.f32.mrf.mxu3  ;;  %v489_v51 = vpop.f32.mrf.mxu0 }
 0x13f   : > { %v436_v52 = vpop.f32.mrf.mxu2  ;;  %v502_v53 = vpop.f32.mrf.mxu1 }
 0x146   : > { %v491_v54 = vpop.f32.mrf.mxu0 }
 0x147   : > { %v504_v55 = vpop.f32.mrf.mxu1 }
 0x148   : > { %v553_v56 = vpop.f32.mrf.mxu3 }
 0x149   : > { %v540_v57 = vpop.f32.mrf.mxu2  ;;  %v554_v15 = vadd.f32 %v553_v56, %v502_v53 }
 0x14a   : > { %v541_v12 = vadd.f32 %v540_v57, %v489_v51 }
 0x14e   : > { %v595_v58 = vpop.f32.mrf.mxu0 }
 0x14f   : > { %v608_v59 = vpop.f32.mrf.mxu1  ;;  %v612_v6 = vadd.f32 %v595_v58, %v329_v1 }
 0x150   : > { %v555_v60 = vpop.f32.mrf.mxu3  ;;  %v613_v10 = vadd.f32 %v608_v59, %v342_v2 }
 0x151   : > { %v542_v61 = vpop.f32.mrf.mxu2  ;;  %v734_v19 = vmul.f32 %v730_v7, %v612_v6 }
 0x152   : > { %v735_v22 = vmul.f32 %v731_v11, %v613_v10 }
 0x156   : > { %v597_v62 = vpop.f32.mrf.mxu0 }
 0x157   : > { %v610_v63 = vpop.f32.mrf.mxu1 }
 0x15a   : > { %v665_v3 = vpop.f32.mrf.mxu3 }
 0x15b   : > { %v652_v8 = vpop.f32.mrf.mxu2  ;;  %v670_v16 = vadd.f32 %v665_v3, %v448_v9 }
 0x15c   : > { %v669_v13 = vadd.f32 %v652_v8, %v435_v5 }
 0x15d   : > { %v737_v26 = vadd.f32 %v735_v22, %v670_v16 }
 0x15e   : > { %v709_v17 = vpop.f32.mrf.mxu0  ;;  %v736_v24 = vadd.f32 %v734_v19, %v669_v13 }
 0x15f   : > { %v726_v20 = vadd.f32 %v709_v17, %v541_v12  ;;  %v722_v21 = vpop.f32.mrf.mxu1 }
 0x160   : > { %v727_v23 = vadd.f32 %v722_v21, %v554_v15 }
 0x161   : > { %v745_v25 = vmul.f32 %v741_v14, %v726_v20 }
 0x162   : > { %v746_v27 = vmul.f32 %v742_v18, %v727_v23  ;;  %v667_v28 = vpop.f32.mrf.mxu3 }
 0x163   : > { %v747_v29 = vadd.f32 %v745_v25, %v736_v24  ;;  %v654_v30 = vpop.f32.mrf.mxu2 }
 0x164   : > { %v748_v31 = vadd.f32 %v746_v27, %v737_v26 }
 0x165   : > { %v756_v32 = vmul.f32 %v747_v29, %v747_v29 }
 0x166   : > { %v711_v33 = vpop.f32.mrf.mxu0  ;;  %v751_v34 = vadd.f32 %v748_v31, %v747_v29  ;;  %v757_v35 = vmul.f32 %v748_v31, %v748_v31  ;;  %v749_v36 = vpack.c.bf16 %v748_v31, %v747_v29 }
 0x167   : > { %v724_v37 = vpop.f32.mrf.mxu1 }
 0x168   : > { %752 = vadd.xlane.f32.xlu0 %v751_v34  ;;  %v758_v38 = vadd.f32 %v757_v35, %v756_v32  ;;  %750 = vst [vmem:[%s218_s22] sm:$0xff] %v749_v36 }
 0x169   : > { %1016 = shalt.err (!%p1013_p3)
}
 0x16a   : > { %942 = dma.vmem_to_hbm [thread:$0]  (%p1129_p5), %s785_s16, 128, %s787_s17, %s763_s23   ;;  %759 = vadd.xlane.f32.xlu1 %v758_v38  ;;  %vm754_vm10 = vcmask 7168  }
 0x16b   : > { %s906_s10 = sshll.u32 %s1141_s30, 3 }
 0x16c   : > { %s239_s14 = scalar_lea.vmem %s1283_s4, %s906_s10  ;;  %s243_s25 = scalar_lea.vmem %s1284_s5, %s906_s10 }
 0x1db   : > { %v753_v39 = vpop.xlane.xlu0 %752 }
 0x1dc   : > { %755 = vst.msk [vmem:[%s239_s14] sm:$0xff] %vm754_vm10, %v753_v39 }
 0x1dd   : > { %v760_v40 = vpop.xlane.xlu1 %759 }
 0x1de   : > { %761 = vst.msk [vmem:[%s243_s25] sm:$0xff] %vm754_vm10, %v760_v40 }
 0x1df PF: > { %p948_p4 = scmp.ge.s32.totalorder %s1051_s21, 2  ;;  %s804_s28 = sand.u32 1, %s1039_s18  }
 0x1e0   : > { %s805_s30 = scalar_lea.sflag [#allocation3], %s804_s28 }
 0x1e1   : > { %p945_p5 = pnand %p948_p4, %p1133_p6 }
 0x1e3   : > { %p946_p7 = pneg %p945_p5 }
 0x1e5   : > { %1034 = dma.done.wait (%p946_p7), %s805_s30, 128  }
 0x1e6   : > { %1036 = vsyncadd (%p946_p7), %s805_s30, 4294967168  ;;  %p16_p8 = scmp.ge.s32.totalorder %s1116_s24, 4   ;;  %s1287_s18 = smov %s1043_s19 }
 0x1e7   : > { %s1288_s19 = smov %s1047_s20  ;;  %s1289_s20 = smov %s1127_s27 }
 0x1e8   : > { %s1290_s21 = smov %s1116_s24  ;;  %18 = sbr.rel (!%p16_p8) target bundleno = 3 (0x3), region = 100 }
 0x1ed   :  { %825 = vsyncpa [#allocation3], 1 }
 0x1ee   :  { %827 = vsyncpa [#allocation3 + $0x1], 1 }

</bundles_post_ra>
